<compile_context>
chip_gen: v7x
topology: tpu7x:2x2x1
jax: 0.10.0
libtpu: 0.0.40
codegen_flags: <defaults>
</compile_context>

<pallas_src>
import jax
import jax.numpy as jnp
from jax.experimental import pallas as pl
from jax.experimental.pallas import tpu as pltpu


# Below v7x's 64 MiB physical VMEM (with headroom) and well above the
# 16/32 MiB scoped defaults on v5e / v6e+.
DEFAULT_VMEM_LIMIT_BYTES = 48 * 1024 * 1024


def ca_attention_kernel(x_ref, w1t_ref, w2t_ref, o_ref):
    # x_ref / o_ref: (Bt, C, HW); w1t_ref: (C, Cr); w2t_ref: (Cr, C), f32.
    x = x_ref[...]
    xf = x.astype(jnp.float32)                 # f32 compute regardless of I/O dtype
    hw = xf.shape[-1]

    # Adaptive pooling to 1x1 == mean / max over all spatial positions.
    avg = jnp.sum(xf, axis=-1) * (1.0 / hw)    # (Bt, C)
    mx = jnp.max(xf, axis=-1)                  # (Bt, C)

    # Shared MLP (1x1 convs, no bias). fc2 is linear, so
    # fc2(relu(fc1(avg))) + fc2(relu(fc1(max))) == fc2(relu_a + relu_m).
    w1t = w1t_ref[...]                         # (C, Cr)
    w2t = w2t_ref[...]                         # (Cr, C)
    h = (jnp.maximum(jnp.dot(avg, w1t, preferred_element_type=jnp.float32), 0.0)
         + jnp.maximum(jnp.dot(mx, w1t, preferred_element_type=jnp.float32), 0.0))
    logits = jnp.dot(h, w2t, preferred_element_type=jnp.float32)   # (Bt, C)

    gate = jax.nn.sigmoid(logits)              # (Bt, C)
    o_ref[...] = (gate[:, :, None] * xf).astype(o_ref.dtype)


def _pick_block_b(batch, c, hw, itemsize, vmem_limit_bytes):
    """Largest divisor of `batch` whose block fits the VMEM budget.

    Double-buffered in + out blocks cost ~4 * Bt*C*HW*itemsize; keep that
    under ~half the scoped VMEM limit (=> per-block budget = limit/8).
    Also keep >= 2 grid steps when batch >= 2 so both v7x TensorCores get work.
    """
    budget = vmem_limit_bytes // 8
    bt_max = max(1, budget // max(1, c * hw * itemsize))
    cap = max(1, batch // 2) if batch >= 2 else 1
    bt_max = min(bt_max, cap, batch)
    for bt in range(bt_max, 0, -1):
        if batch % bt == 0:
            return bt
    return 1


def ca_attention(x_nchw, w1, w2, *, block_b=None,
                 vmem_limit_bytes=DEFAULT_VMEM_LIMIT_BYTES,
                 donate_input=False):
    """x_nchw: (B, C, H, W) f32/bf16; w1: (C//r, C); w2: (C, C//r)."""
    B, C, H, W = x_nchw.shape
    HW = H * W
    Cr = w1.shape[0]
    assert w1.shape == (Cr, C) and w2.shape == (C, Cr)

    x = x_nchw.reshape(B, C, HW)
    # Pre-transpose the tiny 1x1-conv weights on the host side so the kernel
    # runs plain (Bt,C)@(C,Cr) / (Bt,Cr)@(Cr,C) matmuls. Keep weights in f32.
    w1t = jnp.transpose(w1).astype(jnp.float32)    # (C, Cr)
    w2t = jnp.transpose(w2).astype(jnp.float32)    # (Cr, C)

    itemsize = jnp.dtype(x.dtype).itemsize
    bt = block_b if block_b is not None else _pick_block_b(
        B, C, HW, itemsize, vmem_limit_bytes)
    assert B % bt == 0, "block_b must divide the batch size"
    grid = (B // bt,)

    out = pl.pallas_call(
        ca_attention_kernel,
        out_shape=jax.ShapeDtypeStruct((B, C, HW), x.dtype),
        grid_spec=pltpu.PrefetchScalarGridSpec(
            num_scalar_prefetch=0,
            grid=grid,
            in_specs=[
                pl.BlockSpec((bt, C, HW), lambda b: (b, 0, 0)),
                pl.BlockSpec((C, Cr), lambda b: (0, 0)),
                pl.BlockSpec((Cr, C), lambda b: (0, 0)),
            ],
            out_specs=pl.BlockSpec((bt, C, HW), lambda b: (b, 0, 0)),
        ),
        compiler_params=pltpu.CompilerParams(
            dimension_semantics=("parallel",),
            vmem_limit_bytes=vmem_limit_bytes,
        ),
        input_output_aliases=({0: 0} if donate_input else {}),
    )(x, w1t, w2t)
    return out.reshape(B, C, H, W)


def ca_attention_ref(x, w1, w2):
    # Pure-JAX reference mirroring the PyTorch forward.
    avg = jnp.mean(x, axis=(2, 3), keepdims=True)            # (B,C,1,1)
    mx = jnp.max(x, axis=(2, 3), keepdims=True)              # (B,C,1,1)

    def mlp(p):                                              # p: (B,C,1,1)
        h = jnp.einsum('oc,bcxy->boxy', w1, p)
        h = jnp.maximum(h, 0.0)
        return jnp.einsum('co,boxy->bcxy', w2, h)

    gate = jax.nn.sigmoid(mlp(avg) + mlp(mx))
    return gate * x


if __name__ == "__main__":
    key = jax.random.PRNGKey(0)
    kx, k1, k2 = jax.random.split(key, 3)

    # Module defaults: in_channels=64, ratio=4. HW = 16*16 = 256 is a multiple
    # of 128, so the gate*x stores are lane-dense / unmasked.
    B, C, H, W = 2, 64, 16, 16
    ratio = 4
    Cr = C // ratio

    x = jax.random.normal(kx, (B, C, H, W), dtype=jnp.float32)
    w1 = jax.random.normal(k1, (Cr, C), dtype=jnp.float32) * 0.1
    w2 = jax.random.normal(k2, (C, Cr), dtype=jnp.float32) * 0.1

    # f32 path.
    out = jax.block_until_ready(ca_attention(x, w1, w2))
    ref = ca_attention_ref(x, w1, w2)
    assert out.shape == (B, C, H, W)
    assert jnp.allclose(out, ref, atol=1e-5, rtol=1e-5), "f32 mismatch vs reference"

    # bf16 I/O path (halves HBM traffic; pooling / MLP still accumulate in f32).
    xb = x.astype(jnp.bfloat16)
    out_bf = jax.block_until_ready(ca_attention(xb, w1, w2))
    ref_bf = ca_attention_ref(xb.astype(jnp.float32), w1, w2)
    assert out_bf.dtype == jnp.bfloat16
    assert jnp.allclose(out_bf.astype(jnp.float32), ref_bf, atol=5e-2, rtol=5e-2), \
        "bf16 mismatch vs reference"

    # Non-multiple-of-128 HW and Bt > 1 path (B=4 -> Bt=2, HW=49 full-axis block).
    x2 = jax.random.normal(kx, (4, C, 7, 7), dtype=jnp.float32)
    out2 = jax.block_until_ready(ca_attention(x2, w1, w2))
    ref2 = ca_attention_ref(x2, w1, w2)
    assert jnp.allclose(out2, ref2, atol=1e-5, rtol=1e-5), "odd-HW mismatch vs reference"

    print("KERNEL_OK")
</pallas_src>

<mosaic_0001>
module attributes {stable_mosaic.version = 11 : i64} {
  func.func @ca_attention_kernel(%arg0: i32, %arg1: memref<1x64x256xf32, #tpu.memory_space<vmem>>, %arg2: memref<64x16xf32, #tpu.memory_space<vmem>>, %arg3: memref<16x64xf32, #tpu.memory_space<vmem>>, %arg4: memref<1x64x256xf32, #tpu.memory_space<vmem>>) attributes {dimension_semantics = [#tpu.dimension_semantics<parallel>], iteration_bounds = array<i64: 2>, scalar_prefetch = 0 : i64, scratch_operands = 0 : i64, tpu.core_type = #tpu.core_type<tc>, window_params = [{transform_indices = @transform_0, window_bounds = array<i64: 1, 64, 256>}, {pipeline_mode = #tpu.pipeline_mode<synchronous>, transform_indices = @transform_1, window_bounds = array<i64: 64, 16>}, {pipeline_mode = #tpu.pipeline_mode<synchronous>, transform_indices = @transform_2, window_bounds = array<i64: 16, 64>}, {transform_indices = @transform_3, window_bounds = array<i64: 1, 64, 256>}]} {
    %c0 = arith.constant 0 : index
    %c0_0 = arith.constant 0 : index
    %c0_1 = arith.constant 0 : index
    %0 = vector.load %arg1[%c0, %c0_0, %c0_1] : memref<1x64x256xf32, #tpu.memory_space<vmem>>, vector<1x64x256xf32>
    %cst = arith.constant dense<0.000000e+00> : vector<1x64xf32>
    %1 = vector.multi_reduction <add>, %0, %cst [2] : vector<1x64x256xf32> to vector<1x64xf32>
    %cst_2 = arith.constant 3.906250e-03 : f32
    %2 = vector.broadcast %cst_2 : f32 to vector<1x64xf32>
    %3 = arith.mulf %1, %2 : vector<1x64xf32>
    %cst_3 = arith.constant dense<0xFF800000> : vector<1x64xf32>
    %4 = vector.multi_reduction <maximumf>, %0, %cst_3 [2] : vector<1x64x256xf32> to vector<1x64xf32>
    %c0_4 = arith.constant 0 : index
    %c0_5 = arith.constant 0 : index
    %5 = vector.load %arg2[%c0_4, %c0_5] : memref<64x16xf32, #tpu.memory_space<vmem>>, vector<64x16xf32>
    %c0_6 = arith.constant 0 : index
    %c0_7 = arith.constant 0 : index
    %6 = vector.load %arg3[%c0_6, %c0_7] : memref<16x64xf32, #tpu.memory_space<vmem>>, vector<16x64xf32>
    %cst_8 = arith.constant dense<0.000000e+00> : vector<1x16xf32>
    %7 = tpu.matmul %3, %5, %cst_8 {dimension_numbers = #tpu.dot_dimension_numbers<[1], [0], [0], [1], [0, 0, 1, 1], [], []>} : vector<1x64xf32>, vector<64x16xf32>, vector<1x16xf32> -> vector<1x16xf32>
    %cst_9 = arith.constant 0.000000e+00 : f32
    %8 = vector.broadcast %cst_9 : f32 to vector<1x16xf32>
    %9 = arith.maximumf %7, %8 : vector<1x16xf32>
    %cst_10 = arith.constant dense<0.000000e+00> : vector<1x16xf32>
    %10 = tpu.matmul %4, %5, %cst_10 {dimension_numbers = #tpu.dot_dimension_numbers<[1], [0], [0], [1], [0, 0, 1, 1], [], []>} : vector<1x64xf32>, vector<64x16xf32>, vector<1x16xf32> -> vector<1x16xf32>
    %cst_11 = arith.constant 0.000000e+00 : f32
    %11 = vector.broadcast %cst_11 : f32 to vector<1x16xf32>
    %12 = arith.maximumf %10, %11 : vector<1x16xf32>
    %13 = arith.addf %9, %12 : vector<1x16xf32>
    %cst_12 = arith.constant dense<0.000000e+00> : vector<1x64xf32>
    %14 = tpu.matmul %13, %6, %cst_12 {dimension_numbers = #tpu.dot_dimension_numbers<[1], [0], [0], [1], [0, 0, 1, 1], [], []>} : vector<1x16xf32>, vector<16x64xf32>, vector<1x64xf32> -> vector<1x64xf32>
    %15 = arith.negf %14 : vector<1x64xf32>
    %16 = math.exp %15 : vector<1x64xf32>
    %cst_13 = arith.constant 1.000000e+00 : f32
    %17 = vector.broadcast %cst_13 : f32 to vector<1x64xf32>
    %18 = arith.addf %17, %16 : vector<1x64xf32>
    %19 = arith.divf %17, %18 : vector<1x64xf32>
    %20 = vector.shape_cast %19 : vector<1x64xf32> to vector<1x64x1xf32>
    %21 = vector.broadcast %20 : vector<1x64x1xf32> to vector<1x64x256xf32>
    %22 = arith.mulf %21, %0 : vector<1x64x256xf32>
    %c0_14 = arith.constant 0 : index
    %c0_15 = arith.constant 0 : index
    %c0_16 = arith.constant 0 : index
    %23 = vector.load %arg4[%c0_14, %c0_15, %c0_16] : memref<1x64x256xf32, #tpu.memory_space<vmem>>, vector<1x64x256xf32>
    tpu.vector_store %arg4[%c0_14, %c0_15, %c0_16], %22 {strides = array<i32>} : memref<1x64x256xf32, #tpu.memory_space<vmem>>, vector<1x64x256xf32>,
    return
  }
  func.func @transform_0(%arg0: i32) -> (i32, i32, i32) {
    %c0_i32 = arith.constant 0 : i32
    %c0_i32_0 = arith.constant 0 : i32
    %c0_i32_1 = arith.constant 0 : i32
    return %arg0, %c0_i32, %c0_i32_0 : i32, i32, i32
  }
  func.func @transform_1(%arg0: i32) -> (i32, i32) {
    %c0_i32 = arith.constant 0 : i32
    %c0_i32_0 = arith.constant 0 : i32
    %c0_i32_1 = arith.constant 0 : i32
    return %c0_i32, %c0_i32_0 : i32, i32
  }
  func.func @transform_2(%arg0: i32) -> (i32, i32) {
    %c0_i32 = arith.constant 0 : i32
    %c0_i32_0 = arith.constant 0 : i32
    %c0_i32_1 = arith.constant 0 : i32
    return %c0_i32, %c0_i32_0 : i32, i32
  }
  func.func @transform_3(%arg0: i32) -> (i32, i32, i32) {
    %c0_i32 = arith.constant 0 : i32
    %c0_i32_0 = arith.constant 0 : i32
    %c0_i32_1 = arith.constant 0 : i32
    return %arg0, %c0_i32, %c0_i32_0 : i32, i32, i32
  }
}

</mosaic_0001>

<bundles_post_ra>
// kernel: tpu_custom_call.1
= control target key start
LH: loop header
LB: loop body
LE: loop exit
PB: predicated region body
PF: predicated region fallthrough
CT: control target
= control target key end

     0   :  { %8 = vsyncpa [#allocation3], 0  ;;  %s1404_s0 = inlined_call_operand.hbm [shape: f32[2,64,256], index: 0, kind: input, shape index: {}]   ;;  %s1405_s1 = inlined_call_operand.vmem [shape: f32[64,16], index: 1, kind: input, shape index: {}]   ;;  %s1406_s2 = inlined_call_operand.vmem [shape: f32[16,64], index: 2, kind: input, shape index: {}]   ;;  %s1407_s3 = inlined_call_operand.hbm [shape: f32[2,64,256], index: 3, kind: output, shape index: {}]  }
   0x1   :  { %10 = vsyncpa [#allocation3 + $0x1], 0 }
   0x2   :  { %11 = vsyncpa [#allocation4], 0 }
   0x3   :  { %13 = vsyncpa [#allocation4 + $0x1], 0  ;;  %s1060_s12 = smov 0   ;;  %s1062_s13 = smov 0  }
   0x4   :  { %s1064_s14 = smov 0   ;;  %s1066_s15 = smov 0  }
   0x5 LB: > { %s1081_s16 = sadd.s32 4294967295, %s1029_s15   ;;  %s763_s17 = sadd.s32 4294967294, %s1029_s15   ;;  %s1029_s15 = sphi %s1066_s15, %s1420_s15   ;;  %s1025_s14 = sphi %s1064_s14, %s1419_s14   ;;  %s1021_s13 = sphi %s1062_s13, %s1418_s13   ;;  %s1017_s12 = sphi %s1060_s12, %s1417_s12  }
   0x6   : > { %s1085_s18 = sadd.s32 1, %s1029_s15   ;;  %s26_s19 = sadd.s32 1, %s1025_s14 }
   0x7   : > { %s23_s20 = ssub.s32 %s1029_s15, %s1085_s18  ;;  %p33_p0 = scmp.ne.s32.totalorder %s1025_s14, %s1021_s13 }
   0x8   : > { %p24_p1 = scmp.eq.s32.totalorder %s23_s20, 0  ;;  %p34_p2 = scmp.eq.s32.totalorder %s1029_s15, 0 }
   0x9   : > { %p39_p3 = scmp.ne.s32.totalorder %s1021_s13, %s1017_s12  ;;  %p40_p4 = scmp.eq.s32.totalorder %s1081_s16, 0 }
   0xa   : > { %s1097_s21 = scalar_select %p24_p1, %s1025_s14, %s26_s19  }
   0xb   : > { %p1099_p5 = por %p34_p2, %p33_p0  ;;  %p1103_p6 = por %p40_p4, %p39_p3 }
   0xc   : > { %p105_p7 = scmp.eq.s32.totalorder %s1081_s16, 1  ;;  %p111_p8 = scmp.eq.s32.totalorder %s763_s17, 1 }
   0xd   : > { %p888_p10 = scmp.lt.s32.totalorder %s1029_s15, 2  ;;  %s137_s26 = sand.u32 1, %s1025_s14  }
   0xe   : > { %p1110_p11 = por %p105_p7, %p33_p0  ;;  %p1114_p12 = por %p111_p8, %p39_p3 }
   0xf   : > { %s781_s27 = sshll.u32 %s1029_s15, 11  ;;  %s766_s28 = sshll.u32 %s137_s26, 7 }
  0x10   : > { %s1411_s24 = scalar_select %p1110_p11, 1, 0 }
  0x11   : > { %s1412_s25 = scalar_select %p1114_p12, 1, 0 }
  0x12   : > { %s1123_s4 = scalar_lea.hbm %s1404_s0, %s781_s27  ;;  %s141_s5 = scalar_lea.vmem [#allocation2], %s766_s28 }
  0x13   : > { %s148_s6 = sshll.u32 %s141_s5, 4  ;;  %p1127_p13 = pnand %p888_p10, %p1099_p5  ;;  %s1131_s6 = int_to_ptr.vmem [resolvable:$true] %s148_s6 }
  0x14   : > { %s1133_s8 = scalar_lea.sflag [#allocation3], %s137_s26  ;;  %s933_s9 = scalar_lea.hbm %s1123_s4, 2048 }
  0x15   : > { %p934_p0 = scmp.ne.s32.totalorder %s1123_s4, %s933_s9  ;;  %p935_p1 = pneg %p1127_p13 }
  0x16   : > { %s938_s17 = scalar_lea.hbm %s1404_s0, 4096  ;;  %p939_p4 = scmp.lt.u32.totalorder %s1123_s4, %s1404_s0 }
  0x17   : > { %p936_p2 = pnand %p935_p1, %p934_p0  ;;  %p940_p5 = scmp.lt.u32.totalorder %s938_s17, %s933_s9 }
  0x18   : > { %p942_p8 = scmp.lt.u32.totalorder %s933_s9, %s1123_s4 }
  0x19   : > { %p937_p3 = pneg %p936_p2  ;;  %p941_p7 = por %p940_p5, %p939_p4 }
  0x1b   : > { %p943_p10 = por %p942_p8, %p941_p7 }
  0x1d   : > { %p944_p9 = pnand %p943_p10, %p937_p3 }
  0x1f   : > { %947 = shalt.err (!%p944_p9)
}
  0x20   : > { %s948_s22 = scalar_lea.vmem %s1131_s6, 2048  ;;  %s1031_s26 = smov [#allocation2]  }
  0x21   : > { %p949_p0 = scmp.ne.s32.totalorder %s1131_s6, %s948_s22  ;;  %s953_s27 = sshll.u32 %s1031_s26, 4  ;;  %s954_s27 = int_to_ptr.vmem [resolvable:$false] %s953_s27 }
  0x22   : > { %s955_s28 = scalar_lea.vmem %s954_s27, 4096  ;;  %p956_p11 = scmp.lt.s32.totalorder %s1131_s6, %s954_s27 }
  0x23   : > { %p951_p2 = pnand %p949_p0, %p935_p1  ;;  %p957_p4 = scmp.lt.s32.totalorder %s955_s28, %s948_s22 }
  0x25   : > { %p952_p12 = pneg %p951_p2  ;;  %p958_p5 = por %p957_p4, %p956_p11 }
  0x27   : > { %p959_p7 = pnand %p958_p5, %p952_p12 }
  0x29   : > { %962 = shalt.err (!%p959_p7)
}
  0x2a   : > { %s1032_s29 = smov 256   ;;  %s1033_s30 = smov 16  }
  0x2b   : > { %883 = dma.hbm_to_vmem [thread:$0]  (!%p1127_p13), %s1123_s4, 2048, %s1131_s6, %s1133_s8, %s1032_s29, %s1032_s29, %s1033_s30  }
  0x2c   : > { %p769_p9 = scmp.ge.s32.totalorder %s1029_s15, 1  ;;  %p156_p1 = scmp.lt.s32.totalorder %s1029_s15, 3 }
  0x2e   : > { %p157_p3 = pnand %p769_p9, %p156_p1 }
  0x2f   : > { %s1164_s5 = sand.u32 (!%p157_p3), 1, %s1021_s13  }
  0x30   : > { %160 = sbr.rel (%p157_p3) target bundleno = 838 (0x346), region = 32  ;;  %s770_s9 = sshll.u32 (!%p157_p3), %s1164_s5, 7 }
  0x31   : > { %s163_s10 = scalar_lea.sflag (!%p157_p3), [#allocation3], %s1164_s5  ;;  %s1170_s11 = scalar_lea.vmem (!%p157_p3), [#allocation2], %s770_s9 }
  0x37   : > { %1008 = dma.done.wait (%p1103_p6), %s163_s10, 2048  }
  0x38   : > { %1010 = vsyncadd (%p1103_p6), %s163_s10, 4294965248  ;;  %v1177_v0 = vld [vmem:[%s1170_s11 + $0x20] sm:$0xff]  ;;  %v1180_v1 = vld [vmem:[%s1170_s11 + $0x28] sm:$0xff]  ;;  %v1034_v35 = vmov 0.0|0.0   ;;  %vm1035_vm0 = vmmov 0   ;;  %v1036_v45 = vmov 0.0   ;;  %v279_v48 = vlaneseq }
  0x39   : > { %v1183_v2 = vld [vmem:[%s1170_s11] sm:$0xff]  ;;  %v211_v3 = vadd.f32 %v1180_v1, %v1177_v0  ;;  %v1188_v4 = vld [vmem:[%s1170_s11 + $0x8] sm:$0xff]  ;;  %v1191_v5 = vld [vmem:[%s1170_s11 + $0x30] sm:$0xff]  ;;  %v243_v16 = vmax.f32 %v1177_v0, %v1180_v1  ;;  %849 = vmatprep.subr.bf16.mxu0 %v1034_v35  ;;  %861 = vmatprep.subr.bf16.mxu1 %v1034_v35  ;;  %vm290_vm1 = vcmask 130112   ;;  %vm297_vm2 = vcmask 195712   ;;  %s1323_s8 = scalar_lea.vmem [#allocation5], %s770_s9 }
  0x3a   : > { %v1194_v6 = vld [vmem:[%s1170_s11 + $0x38] sm:$0xff]  ;;  %v205_v7 = vadd.f32 %v1188_v4, %v1183_v2  ;;  %v1199_v8 = vld [vmem:[%s1170_s11 + $0x10] sm:$0xff]  ;;  %v237_v13 = vmax.f32 %v1183_v2, %v1188_v4  ;;  %v1213_v14 = vld [vmem:[%s1170_s11 + $0x40] sm:$0xff]  ;;  %820 = vmatprep.mubr.msk.f32.mxu0 %vm1035_vm0, %v1036_v45  ;;  %839 = vmatprep.mubr.msk.f32.mxu1 %vm1035_vm0, %v1036_v45  ;;  %v280_v51 = vand.u32 127, %v279_v48  ;;  %v1284_v55 = vshrl.u32 %v279_v48, 7  ;;  %s782_s9 = sshll.u32 %s1081_s16, 11 }
  0x3b   : > { %v1202_v9 = vld [vmem:[%s1170_s11 + $0x18] sm:$0xff]  ;;  %212 = vadd.xlane.f32.xlu1 %v211_v3  ;;  %v214_v10 = vadd.f32 %v1194_v6, %v1191_v5  ;;  %v1216_v15 = vld [vmem:[%s1170_s11 + $0x48] sm:$0xff]  ;;  %v1223_v18 = vld [vmem:[%s1170_s11 + $0x50] sm:$0xff]  ;;  %v246_v20 = vmax.f32 %v1191_v5, %v1194_v6  ;;  %vm304_vm3 = vcmask 261312   ;;  %vm311_vm4 = vcmask 326912   ;;  %s690_s17 = sshll.u32 %s1323_s8, 4  ;;  %s1354_s22 = scalar_lea.hbm %s1407_s3, %s782_s9  ;;  %s1356_s17 = int_to_ptr.vmem [resolvable:$true] %s690_s17 }
  0x3c   : > { %206 = vadd.xlane.f32.xlu0 %v205_v7  ;;  %v208_v11 = vadd.f32 %v1202_v9, %v1199_v8  ;;  %v240_v12 = vmax.f32 %v1199_v8, %v1202_v9  ;;  %v217_v17 = vadd.f32 %v1216_v15, %v1213_v14  ;;  %v1226_v19 = vld [vmem:[%s1170_s11 + $0x58] sm:$0xff]  ;;  %v1233_v22 = vld [vmem:[%s1170_s11 + $0x60] sm:$0xff]  ;;  %v1236_v23 = vld [vmem:[%s1170_s11 + $0x68] sm:$0xff]  ;;  %v249_v24 = vmax.f32 %v1213_v14, %v1216_v15  ;;  %s677_s16 = scalar_lea.sflag [#allocation4], %s1164_s5  ;;  %s963_s26 = scalar_lea.vmem %s1356_s17, 2048 }
  0x3d   : > { %v220_v21 = vadd.f32 %v1226_v19, %v1223_v18  ;;  %v223_v25 = vadd.f32 %v1236_v23, %v1233_v22  ;;  %v1243_v26 = vld [vmem:[%s1170_s11 + $0x70] sm:$0xff]  ;;  %v1246_v27 = vld [vmem:[%s1170_s11 + $0x78] sm:$0xff]  ;;  %v252_v28 = vmax.f32 %v1223_v18, %v1226_v19  ;;  %v255_v31 = vmax.f32 %v1233_v22, %v1236_v23  ;;  %v261_v32 = vld [vmem:[%s1405_s1] sm:$0xff]  ;;  %p964_p6 = scmp.ne.s32.totalorder %s1356_s17, %s963_s26  ;;  %p1414_p11 = scmp.ne.s32.totalorder %s1411_s24, 0 }
  0x3e   : > { %v226_v29 = vadd.f32 %v1246_v27, %v1243_v26  ;;  %v258_v30 = vmax.f32 %v1243_v26, %v1246_v27  ;;  %v262_v33 = vld [vmem:[%s1405_s1 + $0x8] sm:$0xff]  ;;  %v263_v36 = vld [vmem:[%s1405_s1 + $0x10] sm:$0xff]  ;;  %v264_v37 = vld [vmem:[%s1405_s1 + $0x18] sm:$0xff]  ;;  %v285_v52 = vadd.s32 4294967288, %v280_v51  ;;  %v292_v59 = vadd.s32 4294967280, %v280_v51  ;;  %s1037_s27 = smov [#allocation5]  }
  0x3f   : > { %215 = vadd.xlane.f32.xlu1 %v214_v10  ;;  %v850_v34 = vpack.c.bf16 %v262_v33, %v261_v32  ;;  %v853_v38 = vpack.c.bf16 %v264_v37, %v263_v36  ;;  %v265_v39 = vld [vmem:[%s1405_s1 + $0x20] sm:$0xff]  ;;  %v266_v40 = vld [vmem:[%s1405_s1 + $0x28] sm:$0xff]  ;;  %v267_v42 = vld [vmem:[%s1405_s1 + $0x30] sm:$0xff]  ;;  %v283_v61 = vsub.s32 %v280_v51, %v1284_v55  ;;  %v299_v63 = vadd.s32 4294967272, %v280_v51  ;;  %p965_p12 = pnand %p964_p6, %p1414_p11  ;;  %s967_s28 = sshll.u32 %s1037_s27, 4  ;;  %s968_s28 = int_to_ptr.vmem [resolvable:$false] %s967_s28 }
  0x40   : > { %209 = vadd.xlane.f32.xlu0 %v208_v11  ;;  %v856_v41 = vpack.c.bf16 %v266_v40, %v265_v39  ;;  %v268_v43 = vld [vmem:[%s1405_s1 + $0x38] sm:$0xff]  ;;  %v288_v56 = vsub.s32 %v285_v52, %v1284_v55  ;;  %v306_v3 = vadd.s32 4294967264, %v280_v51  ;;  %v313_v11 = vadd.s32 4294967256, %v280_v51  ;;  %s969_s29 = scalar_lea.vmem %s968_s28, 4096  ;;  %p970_p8 = scmp.lt.s32.totalorder %s1356_s17, %s968_s28 }
  0x41   : > { %851 = vmatpush3.bf16.msra.mxu0 %v850_v34  ;;  %863 = vmatpush3.bf16.msra.mxu1 %v850_v34  ;;  %v859_v44 = vpack.c.bf16 %v268_v43, %v267_v42  ;;  %v327_v33 = vadd.s32 4294967240, %v280_v51  ;;  %vm318_vm5 = vcmask 392512   ;;  %vm325_vm6 = vcmask 458112   ;;  %p966_p13 = pneg %p965_p12  ;;  %p971_p10 = scmp.lt.s32.totalorder %s969_s29, %s963_s26 }
  0x42   : > { %852 = vmatprep.subr.bf16.mxu0 %v1034_v35  ;;  %864 = vmatprep.subr.bf16.mxu1 %v1034_v35  ;;  %vm332_vm7 = vcmask 523712   ;;  %vm334_vm8 = vcmask 523264   ;;  %vm529_vm9 = vcmask 130048  }
  0x43   : > { %241 = vmax.xlane.f32.xlu1 %v240_v12  ;;  %v295_v12 = vsub.s32 %v292_v59, %v1284_v55  ;;  %p972_p0 = por %p971_p10, %p970_p8 }
  0x44   : > { %238 = vmax.xlane.f32.xlu0 %v237_v13 }
  0x45   : > { %854 = vmatpush3.bf16.msra.mxu0 %v853_v38  ;;  %866 = vmatpush3.bf16.msra.mxu1 %v853_v38  ;;  %p973_p2 = pnand %p972_p0, %p966_p13 }
  0x46   : > { %855 = vmatprep.subr.bf16.mxu0 %v1034_v35  ;;  %867 = vmatprep.subr.bf16.mxu1 %v1034_v35 }
  0x47   : > { %244 = vmax.xlane.f32.xlu1 %v243_v16 }
  0x48   : > { %218 = vadd.xlane.f32.xlu0 %v217_v17  ;;  %v320_v17 = vadd.s32 4294967248, %v280_v51 }
  0x49   : > { %857 = vmatpush3.bf16.msra.mxu0 %v856_v41  ;;  %869 = vmatpush3.bf16.msra.mxu1 %v856_v41 }
  0x4a   : > { %858 = vmatprep.subr.bf16.mxu0 %v1034_v35  ;;  %870 = vmatprep.subr.bf16.mxu1 %v1034_v35 }
  0x4b   : > { %247 = vmax.xlane.f32.xlu1 %v246_v20 }
  0x4c   : > { %221 = vadd.xlane.f32.xlu0 %v220_v21  ;;  %v302_v21 = vsub.s32 %v299_v63, %v1284_v55 }
  0x4d   : > { %860 = vmatpush3.bf16.msra.mxu0 %v859_v44  ;;  %872 = vmatpush3.bf16.msra.mxu1 %v859_v44 }
  0x4e   : > { %873 = vmatprep.subr.bf16.mxu0 %v1034_v35  ;;  %v323_v35 = vsub.s32 %v320_v17, %v1284_v55 }
  0x4f   : > { %250 = vmax.xlane.f32.xlu1 %v249_v24 }
  0x50   : > { %224 = vadd.xlane.f32.xlu0 %v223_v25  ;;  %v309_v25 = vsub.s32 %v306_v3, %v1284_v55 }
  0x53   : > { %253 = vmax.xlane.f32.xlu1 %v252_v28 }
  0x54   : > { %227 = vadd.xlane.f32.xlu0 %v226_v29 }
  0x57   : > { %259 = vmax.xlane.f32.xlu1 %v258_v30  ;;  %v316_v30 = vsub.s32 %v313_v11, %v1284_v55 }
  0x58   : > { %256 = vmax.xlane.f32.xlu0 %v255_v31 }
  0xc8   : > { %v213_v46 = vpop.xlane.xlu1 %212 }
  0xc9   : > { %v207_v47 = vpop.xlane.xlu0 %206  ;;  %v231_v13 = vmul.f32 0.00390625, %v213_v46 }
  0xca   : > { %v229_v62 = vmul.f32 0.00390625, %v207_v47  ;;  %v330_v47 = vsub.s32 %v327_v33, %v1284_v55 }
  0xcb   : > { %v296_v34 = vrot.slane %v231_v13, %v295_v12 }
  0xcc   : > { %v216_v49 = vpop.xlane.xlu1 %215  ;;  %v284_v20 = vrot.slane %v229_v62, %v283_v61 }
  0xcd   : > { %v210_v50 = vpop.xlane.xlu0 %209  ;;  %v232_v24 = vmul.f32 0.00390625, %v216_v49 }
  0xce   : > { %v230_v57 = vmul.f32 0.00390625, %v210_v50 }
  0xcf   : > { %v303_v37 = vrot.slane %v232_v24, %v302_v21 }
  0xd0   : > { %v242_v53 = vpop.xlane.xlu1 %241  ;;  %v289_v7 = vrot.slane %v230_v57, %v288_v56 }
  0xd1   : > { %v239_v54 = vpop.xlane.xlu0 %238  ;;  %v423_v39 = vrot.slane %v242_v53, %v288_v56 }
  0xd2   : > { %v291_v29 = vsel %vm290_vm1, %v289_v7, %v284_v20  ;;  %v419_v40 = vrot.slane %v239_v54, %v283_v61  ;;  %v269_v20 = vld [vmem:[%s1406_s2] sm:$0xff] }
  0xd3   : > { %v298_v41 = vsel %vm297_vm2, %v296_v34, %v291_v29 }
  0xd4   : > { %v245_v58 = vpop.xlane.xlu1 %244  ;;  %v305_v51 = vsel %vm304_vm3, %v303_v37, %v298_v41  ;;  %v424_v53 = vsel %vm290_vm1, %v423_v39, %v419_v40 }
  0xd5   : > { %v219_v60 = vpop.xlane.xlu0 %218  ;;  %v428_v43 = vrot.slane %v245_v58, %v295_v12 }
  0xd6   : > { %v233_v28 = vmul.f32 0.00390625, %v219_v60 }
  0xd7   : > { %v429_v58 = vsel %vm297_vm2, %v428_v43, %v424_v53 }
  0xd8   : > { %v248_v10 = vpop.xlane.xlu1 %247  ;;  %v310_v42 = vrot.slane %v233_v28, %v309_v25 }
  0xd9   : > { %v222_v16 = vpop.xlane.xlu0 %221  ;;  %v433_v48 = vrot.slane %v248_v10, %v302_v21  ;;  %v270_v21 = vld [vmem:[%s1406_s2 + $0x8] sm:$0xff] }
  0xda   : > { %v234_v31 = vmul.f32 0.00390625, %v222_v16  ;;  %v312_v54 = vsel %vm311_vm4, %v310_v42, %v305_v51  ;;  %v874_v24 = vpack.c.bf16 %v270_v21, %v269_v20 }
  0xdb   : > { %v434_v62 = vsel %vm304_vm3, %v433_v48, %v429_v58 }
  0xdc   : > { %v251_v32 = vpop.xlane.xlu1 %250  ;;  %v317_v44 = vrot.slane %v234_v31, %v316_v30 }
  0xdd   : > { %v225_v36 = vpop.xlane.xlu0 %224  ;;  %v438_v52 = vrot.slane %v251_v32, %v309_v25 }
  0xde   : > { %v235_v38 = vmul.f32 0.00390625, %v225_v36  ;;  %v319_v59 = vsel %vm318_vm5, %v317_v44, %v312_v54 }
  0xdf   : > { %v439_v10 = vsel %vm311_vm4, %v438_v52, %v434_v62 }
  0xe0   : > { %v254_v46 = vpop.xlane.xlu1 %253  ;;  %v324_v49 = vrot.slane %v235_v38, %v323_v35  ;;  %v611_v38 = vsub.s32 0, %v1284_v55 }
  0xe1   : > { %v228_v50 = vpop.xlane.xlu0 %227  ;;  %v443_v56 = vrot.slane %v254_v46, %v316_v30 }
  0xe2   : > { %v236_v57 = vmul.f32 0.00390625, %v228_v50  ;;  %v326_v7 = vsel %vm325_vm6, %v324_v49, %v319_v59 }
  0xe3   : > { %v444_v13 = vsel %vm318_vm5, %v443_v56, %v439_v10 }
  0xe4   : > { %v331_v60 = vrot.slane %v236_v57, %v330_v47  ;;  %v260_v61 = vpop.xlane.xlu1 %259 }
  0xe5   : > { %v257_v63 = vpop.xlane.xlu0 %256  ;;  %v453_v3 = vrot.slane %v260_v61, %v330_v47 }
  0xe6   : > { %v448_v11 = vrot.slane %v257_v63, %v323_v35  ;;  %v333_v12 = vsel %vm332_vm7, %v331_v60, %v326_v7 }
  0xe7   : > { %821 = vmatmul.mubr.msk.f32.vlgmr.msra.gmra.mrb[0].mxu0 %vm334_vm8, %v333_v12 }
  0xe8   : > { %v449_v16 = vsel %vm325_vm6, %v448_v11, %v444_v13  ;;  %846 = vmatprep.mubr.msk.f32.mxu0 %vm1035_vm0, %v1036_v45  ;;  %875 = vmatpush3.bf16.msra.mxu0 %v874_v24 }
  0xe9   : > { %v454_v17 = vsel %vm332_vm7, %v453_v3, %v449_v16 }
  0xea   : > { %840 = vmatmul.mubr.msk.f32.vlgmr.msra.gmra.mrb[0].mxu1 %vm334_vm8, %v454_v17 }
 0x1ba   : > { %v403_v25 = vpop.f32.mrb[0].mxu0 }
 0x1bb   : > { %v822_v28 = vpop.f32.mrb[1].mxu0  ;;  %v407_v30 = vmax.f32 %v403_v25, 0.0 }
 0x1bd   : > { %v523_v29 = vpop.f32.mrb[0].mxu1 }
 0x1be   : > { %v527_v31 = vmax.f32 %v523_v29, 0.0  ;;  %v841_v32 = vpop.f32.mrb[1].mxu1 }
 0x1c0   : > { %v528_v45 = vadd.f32 %v527_v31, %v407_v30 }
 0x1c2   : > { %847 = vmatmul.mubr.msk.f32.vlgmr.msra.gmra.mrb[2].mxu0 %vm529_vm9, %v528_v45 }
 0x295   : > { %v599_v33 = vpop.f32.mrb[2].mxu0 }
 0x296   : > { %v775_v34 = vmul.f32 -1.442695, %v599_v33  ;;  %v848_v35 = vpop.f32.mrb[3].mxu0 }
 0x298   : > { %929 = vpow2.f32 %v775_v34 }
 0x2a2   : > { %v930_v36 = vpop.eup %929 }
 0x2a3   : > { %v606_v37 = vadd.f32 1.0, %v930_v36 }
 0x2a5   : > { %931 = vrcp.f32 %v606_v37 }
 0x2af   : > { %v932_v39 = vpop.eup %931 }
 0x2b0   : > { %v612_v40 = vrot.slane %v932_v39, %v611_v38 }
 0x2b2   : > { %618 = vbcast.lane.b32.xlu1 %v612_v40, 264  ;;  %614 = vbcast.lane.b32.xlu0 %v612_v40, 256 }
 0x2b6   : > { %622 = vbcast.lane.b32.xlu1 %v612_v40, 272  ;;  %630 = vbcast.lane.b32.xlu0 %v612_v40, 288 }
 0x2ba   : > { %626 = vbcast.lane.b32.xlu1 %v612_v40, 280  ;;  %638 = vbcast.lane.b32.xlu0 %v612_v40, 304 }
 0x2be   : > { %634 = vbcast.lane.b32.xlu1 %v612_v40, 296 }
 0x2c2   : > { %642 = vbcast.lane.b32.xlu1 %v612_v40, 312 }
 0x324   : > { %v619_v41 = vpop.permute.xlu1 %618  ;;  %v615_v42 = vpop.permute.xlu0 %614 }
 0x325   : > { %v646_v43 = vmul.f32 %v619_v41, %v1199_v8  ;;  %v647_v44 = vmul.f32 %v619_v41, %v1202_v9  ;;  %v644_v46 = vmul.f32 %v615_v42, %v1183_v2  ;;  %v645_v55 = vmul.f32 %v615_v42, %v1188_v4 }
 0x327   : > { %662 = vst [vmem:[%s1323_s8 + $0x10] sm:$0xff] %v646_v43  ;;  %663 = vst [vmem:[%s1323_s8 + $0x18] sm:$0xff] %v647_v44 }
 0x328   : > { %660 = vst [vmem:[%s1323_s8] sm:$0xff] %v644_v46  ;;  %661 = vst [vmem:[%s1323_s8 + $0x8] sm:$0xff] %v645_v55  ;;  %v623_v8 = vpop.permute.xlu1 %622  ;;  %v631_v2 = vpop.permute.xlu0 %630 }
 0x329   : > { %v648_v4 = vmul.f32 %v623_v8, %v1177_v0  ;;  %v649_v9 = vmul.f32 %v623_v8, %v1180_v1  ;;  %v652_v47 = vmul.f32 %v631_v2, %v1213_v14  ;;  %v653_v48 = vmul.f32 %v631_v2, %v1216_v15 }
 0x32b   : > { %664 = vst [vmem:[%s1323_s8 + $0x20] sm:$0xff] %v648_v4  ;;  %665 = vst [vmem:[%s1323_s8 + $0x28] sm:$0xff] %v649_v9 }
 0x32c   : > { %668 = vst [vmem:[%s1323_s8 + $0x40] sm:$0xff] %v652_v47  ;;  %669 = vst [vmem:[%s1323_s8 + $0x48] sm:$0xff] %v653_v48  ;;  %v627_v49 = vpop.permute.xlu1 %626  ;;  %v639_v50 = vpop.permute.xlu0 %638 }
 0x32d   : > { %v650_v0 = vmul.f32 %v627_v49, %v1191_v5  ;;  %v651_v51 = vmul.f32 %v627_v49, %v1194_v6  ;;  %v656_v1 = vmul.f32 %v639_v50, %v1233_v22  ;;  %v657_v14 = vmul.f32 %v639_v50, %v1236_v23 }
 0x32f   : > { %666 = vst [vmem:[%s1323_s8 + $0x30] sm:$0xff] %v650_v0  ;;  %667 = vst [vmem:[%s1323_s8 + $0x38] sm:$0xff] %v651_v51 }
 0x330   : > { %672 = vst [vmem:[%s1323_s8 + $0x60] sm:$0xff] %v656_v1  ;;  %673 = vst [vmem:[%s1323_s8 + $0x68] sm:$0xff] %v657_v14  ;;  %v635_v15 = vpop.permute.xlu1 %634 }
 0x331   : > { %v654_v52 = vmul.f32 %v635_v15, %v1223_v18  ;;  %v655_v57 = vmul.f32 %v635_v15, %v1226_v19 }
 0x333   : > { %670 = vst [vmem:[%s1323_s8 + $0x50] sm:$0xff] %v654_v52  ;;  %671 = vst [vmem:[%s1323_s8 + $0x58] sm:$0xff] %v655_v57 }
 0x334   : > { %v643_v5 = vpop.permute.xlu1 %642 }
 0x335   : > { %v658_v6 = vmul.f32 %v643_v5, %v1243_v26  ;;  %v659_v18 = vmul.f32 %v643_v5, %v1246_v27 }
 0x337   : > { %674 = vst [vmem:[%s1323_s8 + $0x70] sm:$0xff] %v658_v6  ;;  %675 = vst [vmem:[%s1323_s8 + $0x78] sm:$0xff] %v659_v18 }
 0x338   : > { %976 = shalt.err (!%p973_p2)
}
 0x339   : > { %s977_s30 = scalar_lea.hbm %s1354_s22, 2048  ;;  %s981_s23 = scalar_lea.hbm %s1407_s3, 4096 }
 0x33a   : > { %p978_p4 = scmp.ne.s32.totalorder %s1354_s22, %s977_s30  ;;  %p982_p9 = scmp.lt.u32.totalorder %s1354_s22, %s1407_s3 }
 0x33b   : > { %p983_p1 = scmp.lt.u32.totalorder %s981_s23, %s977_s30  ;;  %p985_p6 = scmp.lt.u32.totalorder %s977_s30, %s1354_s22 }
 0x33c   : > { %p979_p5 = pnand %p978_p4, %p1414_p11 }
 0x33d   : > { %p984_p3 = por %p983_p1, %p982_p9 }
 0x33e   : > { %p980_p7 = pneg %p979_p5 }
 0x33f   : > { %p986_p12 = por %p985_p6, %p984_p3 }
 0x341   : > { %p987_p13 = pnand %p986_p12, %p980_p7 }
 0x343   : > { %990 = shalt.err (!%p987_p13)
}
 0x344   : > { %s1038_s7 = smov 256   ;;  %s1039_s8 = smov 16  }
 0x345   : > { %878 = dma.vmem_to_hbm [thread:$0]  (%p1414_p11), %s1356_s17, 2048, %s1354_s22, %s677_s16, %s1038_s7, %s1038_s7, %s1039_s8  }
 0x346 PF: > { %s705_s9 = sand.u32 1, %s1017_s12   ;;  %p1415_p8 = scmp.ne.s32.totalorder %s1412_s25, 0 }
 0x347   : > { %p1416_p10 = scmp.ge.s32.totalorder %s1029_s15, 2  ;;  %s706_s19 = scalar_lea.sflag [#allocation4], %s705_s9 }
 0x349   : > { %p885_p0 = pnand %p1416_p10, %p1415_p8 }
 0x34b   : > { %1012 = dma.done.wait (!%p885_p0), %s706_s19, 2048  }
 0x34c   : > { %1014 = vsyncadd (!%p885_p0), %s706_s19, 4294965248  ;;  %p16_p2 = scmp.ge.s32.totalorder %s1085_s18, 4   ;;  %s1417_s12 = smov %s1021_s13 }
 0x34d   : > { %s1418_s13 = smov %s1025_s14  ;;  %s1419_s14 = smov %s1097_s21 }
 0x34e   : > { %s1420_s15 = smov %s1085_s18  ;;  %18 = sbr.rel (!%p16_p2) target bundleno = 5 (0x5), region = 77 }
 0x355   :  { %711 = vsyncpa [#allocation3], 1 }
 0x356   :  { %713 = vsyncpa [#allocation3 + $0x1], 1 }
 0x357   :  { %714 = vsyncpa [#allocation4], 1 }
 0x358   :  { %716 = vsyncpa [#allocation4 + $0x1], 1 }

</bundles_post_ra>
